<compile_context>
chip_gen: v7x
topology: tpu7x:2x2x1
jax: 0.10.0
libtpu: 0.0.40
codegen_flags: <defaults>
</compile_context>

<pallas_src>
import functools

import jax
import jax.numpy as jnp
from jax import lax
from jax.experimental import pallas as pl
from jax.experimental.pallas import tpu as pltpu


_LANE = 128
_MXU_ALIGN = 256          # MXU tile on v6e/v7x (also a multiple of v5e's 128)
_MIN_GRID_STEPS = 8       # ~2 TensorCores x 4 steps each: megacore + DMA/compute overlap
_MAX_TILE_M = 1024        # beyond ~512-1024 rows the tile is already ~HBM roofline


def _round_up(x, m):
    return ((x + m - 1) // m) * m


def _ast_self_output_kernel(x_ref, w_ref, b_ref, o_ref, *, precision):
    # x_ref: (TM, Hp) activation tile
    # w_ref: (Hp_in, Hp_out) weight, already transposed in the wrapper
    # b_ref: (1, Hp_out) bias
    # o_ref: (TM, Hp_out)
    acc = jnp.dot(
        x_ref[...],
        w_ref[...],
        preferred_element_type=jnp.float32,
        precision=precision,
    )
    acc = acc + b_ref[...].astype(jnp.float32)
    # Dropout is identity in inference mode (PyTorch eval()).
    # TODO(synk): training-mode dropout (pltpu.prng_seed + prng_random_bits) not implemented.
    o_ref[...] = acc.astype(o_ref.dtype)


def _pick_block_m(M, Hp, itemsize, vmem_capacity_bytes):
    """Balanced M tile.

    1) largest tile whose working set (2x in buf + 2x out buf + f32 acc +
       single-buffered resident weight/bias) fits ~1/2 of physical VMEM,
    2) capped so the grid has >= _MIN_GRID_STEPS steps and <= _MAX_TILE_M rows,
    3) re-balanced so total waste is < 1 tile, rounded to the MXU row-group.
    """
    budget = vmem_capacity_bytes // 2                      # headroom for Mosaic scratch
    resident = (Hp * Hp + Hp) * itemsize                   # single-buffered weight + bias
    per_row = 4 * Hp * itemsize + 4 * Hp                   # 2x in + 2x out bufs + f32 acc
    tm_vmem = max(_MXU_ALIGN, (budget - resident) // per_row)

    tm_grid_cap = _round_up(pl.cdiv(M, _MIN_GRID_STEPS), _MXU_ALIGN)
    tm_max = int(max(16, min(tm_vmem, tm_grid_cap, _MAX_TILE_M)))

    n_tiles = pl.cdiv(M, tm_max)
    align = _MXU_ALIGN if M >= _MXU_ALIGN else 16          # small shapes: bf16 sublane packing only
    tm = _round_up(pl.cdiv(M, n_tiles), align)
    tm = min(tm, _round_up(M, 16))                         # never exceed (rounded-up) M
    return max(int(tm), 16)


def _resident_spec(block_shape, index_map):
    """BlockSpec for a block with a constant index: single-buffer it (it is never
    re-DMA'd), saving VMEM. Falls back to default buffering on older jax."""
    try:
        return pl.BlockSpec(block_shape, index_map, pipeline_mode=pl.Buffered(1))
    except (TypeError, AttributeError):
        return pl.BlockSpec(block_shape, index_map)


def ast_self_output(hidden_states, input_tensor, weight, bias, *, compute_dtype=None):
    """Forward of ASTSelfOutput: out = dropout(dense(hidden_states)) (inference).

    hidden_states: (B, S, H). weight: (H, H) in torch nn.Linear layout
    (out_features, in_features). bias: (H,). input_tensor is accepted for
    signature parity but unused (the residual add lives in ASTLayer).
    compute_dtype: optionally cast operands (e.g. jnp.bfloat16) for the
    MXU-native inference path; accumulation stays f32 either way.
    """
    del input_tensor
    B, S, H = hidden_states.shape
    out_dtype = hidden_states.dtype

    if compute_dtype is not None:
        hidden_states = hidden_states.astype(compute_dtype)
        weight = weight.astype(compute_dtype)
        bias = bias.astype(compute_dtype)
    in_dtype = hidden_states.dtype
    itemsize = jnp.dtype(in_dtype).itemsize

    # Hoist the weight transpose out of the kernel: one-time (H,H) copy per call
    # instead of an XLU transpose of the resident block on every grid step.
    w_t = weight.T  # (in_features, out_features)

    M = B * S
    x2d = hidden_states.reshape(M, H)

    # Lane-axis padding: H multiple of 128 (lane-dense stores, full MXU columns).
    # No-op for the real AST hidden_size=768.
    Hp = _round_up(H, _LANE)
    if Hp != H:
        x2d = jnp.pad(x2d, ((0, 0), (0, Hp - H)))
        w_t = jnp.pad(w_t, ((0, Hp - H), (0, Hp - H)))
        bias = jnp.pad(bias, (0, Hp - H))
    b2d = bias.reshape(1, Hp)

    # Generation-aware sizing (v7x: 64 MiB per-TC VMEM -> smaller tiles).
    try:
        vmem_capacity = pltpu.get_tpu_info().vmem_capacity_bytes
    except Exception:
        vmem_capacity = 64 * 1024 * 1024  # conservative fallback (v7x per-TC VMEM)
    tm = _pick_block_m(M, Hp, itemsize, vmem_capacity)

    # No M padding / output slice: Pallas masks the (at most one) ragged
    # boundary block, avoiding an extra HBM pad + slice pass of the activation.
    grid = (pl.cdiv(M, tm),)

    # VMEM accounting: double-buffered activation in/out blocks, single-buffered
    # resident weight/bias, plus the in-kernel f32 accumulator.
    vmem_need = (4 * tm * Hp + Hp * Hp + Hp) * itemsize + tm * Hp * 4
    vmem_limit = int(min(vmem_capacity, max(32 * 1024 * 1024, vmem_need * 3 // 2)))

    # f32 inputs: true f32 accuracy on the bf16 MXUs (multi-pass). bf16: native path.
    precision = (lax.Precision.HIGHEST if in_dtype == jnp.float32
                 else lax.Precision.DEFAULT)
    kernel = functools.partial(_ast_self_output_kernel, precision=precision)

    out2d = pl.pallas_call(
        kernel,
        out_shape=jax.ShapeDtypeStruct((M, Hp), out_dtype),
        grid_spec=pltpu.PrefetchScalarGridSpec(
            num_scalar_prefetch=0,
            grid=grid,
            in_specs=[
                pl.BlockSpec((tm, Hp), lambda i: (i, 0)),     # activations: tiled over M
                _resident_spec((Hp, Hp), lambda i: (0, 0)),   # weight: VMEM-resident
                _resident_spec((1, Hp), lambda i: (0, 0)),    # bias: VMEM-resident
            ],
            out_specs=pl.BlockSpec((tm, Hp), lambda i: (i, 0)),
        ),
        compiler_params=pltpu.CompilerParams(
            dimension_semantics=("parallel",),  # independent row tiles -> megacore
            vmem_limit_bytes=vmem_limit,
        ),
        cost_estimate=pl.CostEstimate(
            flops=2 * M * Hp * Hp,
            transcendentals=0,
            bytes_accessed=(2 * M * Hp + Hp * Hp + Hp) * itemsize,
        ),
    )(x2d, w_t, b2d)

    if Hp != H:
        out2d = out2d[:, :H]
    return out2d.reshape(B, S, H)


if __name__ == "__main__":
    # Small config consistent with the module: batch=2, seq=8, hidden=32.
    B, S, H = 2, 8, 32
    key = jax.random.PRNGKey(0)
    k_x, k_res, k_w, k_b = jax.random.split(key, 4)

    hidden_states = jax.random.normal(k_x, (B, S, H), dtype=jnp.float32)
    input_tensor = jax.random.normal(k_res, (B, S, H), dtype=jnp.float32)

    # nn.Linear(hidden_size, hidden_size): weight is (out_features, in_features).
    weight = jax.random.normal(k_w, (H, H), dtype=jnp.float32) * 0.02
    bias = jax.random.normal(k_b, (H,), dtype=jnp.float32) * 0.02

    out = ast_self_output(hidden_states, input_tensor, weight, bias)
    out = jax.block_until_ready(out)

    # Reference: dense + identity dropout (no residual add in this module).
    ref = hidden_states.reshape(-1, H) @ weight.T + bias
    ref = ref.reshape(B, S, H)
    assert jnp.allclose(out, ref, atol=1e-5, rtol=1e-5), "f32 mismatch vs reference"

    # bf16 path (MXU-native, the fast inference path) — f32 accumulation,
    # looser tolerance against the f32 reference.
    out_bf16 = ast_self_output(
        hidden_states.astype(jnp.bfloat16),
        input_tensor,
        weight.astype(jnp.bfloat16),
        bias.astype(jnp.bfloat16),
    )
    out_bf16 = jax.block_until_ready(out_bf16)
    assert jnp.allclose(out_bf16.astype(jnp.float32), ref, atol=5e-2, rtol=5e-2), (
        "bf16 mismatch vs reference"
    )

    print("KERNEL_OK")
</pallas_src>

<mosaic_0001>
module attributes {stable_mosaic.version = 11 : i64} {
  func.func @_ast_self_output_kernel(%arg0: i32, %arg1: memref<16x128xf32, #tpu.memory_space<vmem>>, %arg2: memref<128x128xf32, #tpu.memory_space<vmem>>, %arg3: memref<1x128xf32, #tpu.memory_space<vmem>>, %arg4: memref<16x128xf32, #tpu.memory_space<vmem>>) attributes {dimension_semantics = [#tpu.dimension_semantics<parallel>], iteration_bounds = array<i64: 1>, scalar_prefetch = 0 : i64, scratch_operands = 0 : i64, tpu.core_type = #tpu.core_type<tc>, window_params = [{transform_indices = @transform_0, window_bounds = array<i64: 16, 128>}, {pipeline_mode = #tpu.pipeline_mode<synchronous>, transform_indices = @transform_1, window_bounds = array<i64: 128, 128>}, {pipeline_mode = #tpu.pipeline_mode<synchronous>, transform_indices = @transform_2, window_bounds = array<i64: 1, 128>}, {transform_indices = @transform_3, window_bounds = array<i64: 16, 128>}]} {
    %c0 = arith.constant 0 : index
    %c0_0 = arith.constant 0 : index
    %0 = vector.load %arg1[%c0, %c0_0] : memref<16x128xf32, #tpu.memory_space<vmem>>, vector<16x128xf32>
    %c0_1 = arith.constant 0 : index
    %c0_2 = arith.constant 0 : index
    %1 = vector.load %arg2[%c0_1, %c0_2] : memref<128x128xf32, #tpu.memory_space<vmem>>, vector<128x128xf32>
    %cst = arith.constant dense<0.000000e+00> : vector<16x128xf32>
    %2 = tpu.matmul %0, %1, %cst {dimension_numbers = #tpu.dot_dimension_numbers<[1], [0], [0], [1], [0, 0, 1, 1], [], []>, precision = #tpu.contract_precision<fp32>} : vector<16x128xf32>, vector<128x128xf32>, vector<16x128xf32> -> vector<16x128xf32>
    %c0_3 = arith.constant 0 : index
    %c0_4 = arith.constant 0 : index
    %3 = vector.load %arg3[%c0_3, %c0_4] : memref<1x128xf32, #tpu.memory_space<vmem>>, vector<1x128xf32>
    %4 = vector.broadcast %3 : vector<1x128xf32> to vector<16x128xf32>
    %5 = arith.addf %2, %4 : vector<16x128xf32>
    %c0_5 = arith.constant 0 : index
    %c0_6 = arith.constant 0 : index
    %6 = vector.load %arg4[%c0_5, %c0_6] : memref<16x128xf32, #tpu.memory_space<vmem>>, vector<16x128xf32>
    tpu.vector_store %arg4[%c0_5, %c0_6], %5 {strides = array<i32>} : memref<16x128xf32, #tpu.memory_space<vmem>>, vector<16x128xf32>,
    return
  }
  func.func @transform_0(%arg0: i32) -> (i32, i32) {
    %c0_i32 = arith.constant 0 : i32
    %c0_i32_0 = arith.constant 0 : i32
    return %arg0, %c0_i32 : i32, i32
  }
  func.func @transform_1(%arg0: i32) -> (i32, i32) {
    %c0_i32 = arith.constant 0 : i32
    %c0_i32_0 = arith.constant 0 : i32
    %c0_i32_1 = arith.constant 0 : i32
    return %c0_i32, %c0_i32_0 : i32, i32
  }
  func.func @transform_2(%arg0: i32) -> (i32, i32) {
    %c0_i32 = arith.constant 0 : i32
    %c0_i32_0 = arith.constant 0 : i32
    %c0_i32_1 = arith.constant 0 : i32
    return %c0_i32, %c0_i32_0 : i32, i32
  }
  func.func @transform_3(%arg0: i32) -> (i32, i32) {
    %c0_i32 = arith.constant 0 : i32
    %c0_i32_0 = arith.constant 0 : i32
    return %arg0, %c0_i32 : i32, i32
  }
}

</mosaic_0001>

<bundles_post_ra>
// kernel: tpu_custom_call.1
= control target key start
LH: loop header
LB: loop body
LE: loop exit
PB: predicated region body
PF: predicated region fallthrough
CT: control target
= control target key end

     0   :  { %8 = vsyncpa [#allocation3], 0  ;;  %s1711_s0 = inlined_call_operand.hbm [shape: f32[16,128], index: 0, kind: input, shape index: {}]   ;;  %s1712_s1 = inlined_call_operand.hbm [shape: f32[128,128], index: 1, kind: input, shape index: {}]   ;;  %s1713_s2 = inlined_call_operand.vmem [shape: f32[1,128], index: 2, kind: input, shape index: {}]   ;;  %s1714_s3 = inlined_call_operand.hbm [shape: f32[16,128], index: 3, kind: output, shape index: {}]  }
   0x1   :  { %9 = vsyncpa [#allocation6], 0 }
   0x2   :  { %10 = vsyncpa [#allocation4], 0  ;;  %s1372_s12 = smov [#allocation2]   ;;  %s1300_s16 = scalar_lea.hbm %s1711_s0, 256 }
   0x3   :  { %s16_s13 = sshll.u32 %s1372_s12, 4  ;;  %p1301_p0 = scmp.ne.s32.totalorder %s1711_s0, %s1300_s16  ;;  %s17_s13 = int_to_ptr.vmem [resolvable:$true] %s16_s13 }
   0x4   :  { %p1304_p1 = scmp.lt.u32.totalorder %s1300_s16, %s1711_s0 }
   0x6   :  { %p1306_p2 = pnand %p1304_p1, %p1301_p0 }
   0x8   :  { %1309 = shalt.err (!%p1306_p2)
}
   0x9   :  { %s1310_s21 = scalar_lea.vmem %s17_s13, 256  ;;  %p1315_p4 = scmp.lt.s32.totalorder %s17_s13, %s17_s13 }
   0xa   :  { %p1311_p3 = scmp.ne.s32.totalorder %s17_s13, %s1310_s21  ;;  %p1316_p5 = scmp.lt.s32.totalorder %s1310_s21, %s1310_s21 }
   0xc   :  { %p1317_p6 = por %p1316_p5, %p1315_p4 }
   0xe   :  { %p1318_p7 = pnand %p1317_p6, %p1311_p3 }
  0x10   :  { %1321 = shalt.err (!%p1318_p7)
}
  0x11   :  { %s1373_s22 = smov 128   ;;  %s1374_s23 = smov 8  }
  0x12   :  { %22 = dma.hbm_to_vmem [thread:$0]  %s1711_s0, 256, %s17_s13, [#allocation3], %s1373_s22, %s1373_s22, %s1374_s23  }
  0x13   :  { %s1375_s26 = smov [#allocation5]   ;;  %s1322_s30 = scalar_lea.hbm %s1712_s1, 2048 }
  0x14   :  { %s28_s27 = sshll.u32 %s1375_s26, 4  ;;  %p1323_p8 = scmp.ne.s32.totalorder %s1712_s1, %s1322_s30  ;;  %s29_s27 = int_to_ptr.vmem [resolvable:$true] %s28_s27 }
  0x15   :  { %p1326_p9 = scmp.lt.u32.totalorder %s1322_s30, %s1712_s1 }
  0x17   :  { %p1328_p10 = pnand %p1326_p9, %p1323_p8 }
  0x19   :  { %1331 = shalt.err (!%p1328_p10)
}
  0x1a   :  { %s1332_s8 = scalar_lea.vmem %s29_s27, 2048  ;;  %p1337_p12 = scmp.lt.s32.totalorder %s29_s27, %s29_s27 }
  0x1b   :  { %p1333_p11 = scmp.ne.s32.totalorder %s29_s27, %s1332_s8  ;;  %p1338_p13 = scmp.lt.s32.totalorder %s1332_s8, %s1332_s8 }
  0x1d   :  { %p1339_p0 = por %p1338_p13, %p1337_p12 }
  0x1f   :  { %p1340_p1 = pnand %p1339_p0, %p1333_p11 }
  0x21   :  { %1343 = shalt.err (!%p1340_p1)
}
  0x22   :  { %34 = dma.hbm_to_vmem [thread:$0]  %s1712_s1, 2048, %s29_s27, [#allocation6], %s1373_s22, %s1373_s22, %s1374_s23  }
  0x23   :  { %1366 = dma.done.wait [#allocation3], 256  }
  0x24   :  { %1367 = vsyncadd [#allocation3], 4294967040 }
  0x25   :  { %1368 = dma.done.wait [#allocation6], 2048  }
  0x26   :  { %1369 = vsyncadd [#allocation6], 4294965248  ;;  %v45_v0 = vld [vmem:[#allocation5] sm:$0xff]  ;;  %v46_v1 = vld [vmem:[#allocation5 + $0x8] sm:$0xff]  ;;  %s1376_s11 = smov [#allocation7]  }
  0x27   :  { %v47_v2 = vld [vmem:[#allocation5 + $0x10] sm:$0xff]  ;;  %v69_v3 = vand.u32 4294901760, %v45_v0  ;;  %v72_v4 = vand.u32 4294901760, %v46_v1  ;;  %v1427_v5 = vld [vmem:[#allocation5 + $0x18] sm:$0xff]  ;;  %v1429_v7 = vld [vmem:[#allocation5 + $0x20] sm:$0xff]  ;;  %s759_s12 = sshll.u32 %s1376_s11, 4  ;;  %s760_s12 = int_to_ptr.vmem [resolvable:$true] %s759_s12 }
  0x28   :  { %v75_v6 = vand.u32 4294901760, %v47_v2  ;;  %v1431_v8 = vld [vmem:[#allocation5 + $0x28] sm:$0xff]  ;;  %v78_v9 = vand.u32 4294901760, %v1427_v5  ;;  %v81_v11 = vand.u32 4294901760, %v1429_v7  ;;  %v1440_v14 = vld [vmem:[#allocation5 + $0x30] sm:$0xff]  ;;  %v1442_v15 = vld [vmem:[#allocation5 + $0x38] sm:$0xff]  ;;  %p1349_p3 = scmp.lt.s32.totalorder %s760_s12, %s760_s12 }
  0x29   :  { %v1434_v10 = vpack.c.bf16 %v72_v4, %v69_v3  ;;  %v84_v12 = vand.u32 4294901760, %v1431_v8  ;;  %v43_v16 = vld [vmem:[#allocation2] sm:$0xff]  ;;  %v87_v19 = vand.u32 4294901760, %v1440_v14  ;;  %v90_v20 = vand.u32 4294901760, %v1442_v15  ;;  %v1460_v21 = vld [vmem:[#allocation5 + $0x40] sm:$0xff]  ;;  %v1462_v22 = vld [vmem:[#allocation5 + $0x48] sm:$0xff] }
  0x2a   :  { %v1438_v13 = vpack.c.bf16 %v78_v9, %v75_v6  ;;  %v1448_v17 = vand.u32 4294901760, %v43_v16  ;;  %v93_v26 = vand.u32 4294901760, %v1460_v21  ;;  %v96_v27 = vand.u32 4294901760, %v1462_v22  ;;  %v1480_v28 = vld [vmem:[#allocation5 + $0x50] sm:$0xff]  ;;  %v1482_v29 = vld [vmem:[#allocation5 + $0x58] sm:$0xff]  ;;  %v1497_v36 = vld [vmem:[#allocation5 + $0x60] sm:$0xff] }
  0x2b   :  { %1092 = vmatprep.subr.bf16.mxu1 %v1434_v10  ;;  %1188 = vmatprep.subr.bf16.mxu0 %v1434_v10  ;;  %v1456_v18 = vpack.c.bf16 %v84_v12, %v81_v11  ;;  %v1476_v25 = vpack.c.bf16 %v90_v20, %v87_v19  ;;  %v99_v31 = vand.u32 4294901760, %v1480_v28  ;;  %v44_v33 = vld [vmem:[#allocation2 + $0x8] sm:$0xff]  ;;  %v102_v35 = vand.u32 4294901760, %v1482_v29  ;;  %v1499_v37 = vld [vmem:[#allocation5 + $0x68] sm:$0xff]  ;;  %v1511_v43 = vld [vmem:[#allocation5 + $0x70] sm:$0xff]  ;;  %s1344_s13 = scalar_lea.vmem %s760_s12, 256 }
  0x2c   :  { %1094 = vmatpush3.bf16.msra.mxu1 %v1434_v10  ;;  %1190 = vmatpush3.bf16.msra.mxu0 %v1434_v10  ;;  %v1465_v23 = vsub.f32 %v43_v16, %v1448_v17  ;;  %v1494_v34 = vpack.c.bf16 %v96_v27, %v93_v26  ;;  %v1501_v38 = vsub.f32 %v45_v0, %v69_v3  ;;  %v1505_v40 = vand.u32 4294901760, %v44_v33  ;;  %v1513_v44 = vld [vmem:[#allocation5 + $0x78] sm:$0xff]  ;;  %p1345_p2 = scmp.ne.s32.totalorder %s760_s12, %s1344_s13  ;;  %p1350_p4 = scmp.lt.s32.totalorder %s1344_s13, %s1344_s13 }
  0x2d   :  { %1096 = vmatprep.subr.bf16.mxu1 %v1438_v13  ;;  %1192 = vmatprep.subr.bf16.mxu0 %v1438_v13  ;;  %v1503_v39 = vsub.f32 %v46_v1, %v72_v4  ;;  %v105_v41 = vand.u32 4294901760, %v1497_v36  ;;  %v108_v42 = vand.u32 4294901760, %v1499_v37  ;;  %v1515_v45 = vsub.f32 %v47_v2, %v75_v6 }
  0x2e   :  { %v151_v24 = vand.u32 4294901760, %v1465_v23  ;;  %v1523_v46 = vpack.c.bf16 %v102_v35, %v99_v31  ;;  %v172_v47 = vand.u32 4294901760, %v1501_v38  ;;  %v1528_v49 = vsub.f32 %v1427_v5, %v78_v9  ;;  %p1351_p5 = por %p1350_p4, %p1349_p3 }
  0x2f   :  { %v179_v48 = vand.u32 4294901760, %v1503_v39  ;;  %v111_v50 = vand.u32 4294901760, %v1511_v43  ;;  %v114_v51 = vand.u32 4294901760, %v1513_v44  ;;  %v1533_v52 = vsub.f32 %v44_v33, %v1505_v40 }
  0x30   :  { %1098 = vmatpush3.bf16.msra.mxu1 %v1438_v13  ;;  %1194 = vmatpush3.bf16.msra.mxu0 %v1438_v13  ;;  %v152_v30 = vsub.f32 %v1465_v23, %v151_v24  ;;  %v1541_v53 = vpack.c.bf16 %v108_v42, %v105_v41  ;;  %v186_v54 = vand.u32 4294901760, %v1515_v45  ;;  %v1547_v55 = vsub.f32 %v1429_v7, %v81_v11  ;;  %p1352_p6 = pnand %p1351_p5, %p1345_p2 }
  0x31   :  { %1100 = vmatprep.subr.bf16.mxu1 %v1456_v18  ;;  %1196 = vmatprep.subr.bf16.mxu0 %v1456_v18  ;;  %v173_v56 = vsub.f32 %v1501_v38, %v172_v47  ;;  %v180_v57 = vsub.f32 %v1503_v39, %v179_v48  ;;  %v193_v58 = vand.u32 4294901760, %v1528_v49  ;;  %v1557_v59 = vsub.f32 %v1431_v8, %v84_v12 }
  0x32   :  { %1018 = vmatprep.mubr.f32.mxu0 %v151_v24  ;;  %v153_v32 = vand.u32 4294901760, %v152_v30  ;;  %v1563_v60 = vpack.c.bf16 %v114_v51, %v111_v50  ;;  %v161_v61 = vand.u32 4294901760, %v1533_v52  ;;  %v187_v62 = vsub.f32 %v1515_v45, %v186_v54 }
  0x33   :  { %v200_v63 = vand.u32 4294901760, %v1547_v55  ;;  %v1573_v0 = vsub.f32 %v1440_v14, %v87_v19  ;;  %v1578_v1 = vsub.f32 %v1442_v15, %v90_v20  ;;  %v174_v2 = vand.u32 4294901760, %v173_v56 }
  0x34   :  { %1102 = vmatpush3.bf16.msra.mxu1 %v1456_v18  ;;  %1198 = vmatpush3.bf16.msra.mxu0 %v1456_v18  ;;  %v181_v3 = vand.u32 4294901760, %v180_v57  ;;  %v194_v4 = vsub.f32 %v1528_v49, %v193_v58  ;;  %v207_v5 = vand.u32 4294901760, %v1557_v59  ;;  %v1219_v6 = vpack.c.bf16 %v179_v48, %v172_v47 }
  0x35   :  { %1104 = vmatprep.subr.bf16.mxu1 %v1476_v25  ;;  %1200 = vmatprep.subr.bf16.mxu0 %v1476_v25  ;;  %v162_v7 = vsub.f32 %v1533_v52, %v161_v61  ;;  %v1588_v8 = vsub.f32 %v1460_v21, %v93_v26  ;;  %v188_v9 = vand.u32 4294901760, %v187_v62  ;;  %v201_v11 = vsub.f32 %v1547_v55, %v200_v63 }
  0x36   :  { %913 = vmatprep.mubr.f32.mxu1 %v153_v32  ;;  %v214_v12 = vand.u32 4294901760, %v1573_v0  ;;  %v221_v14 = vand.u32 4294901760, %v1578_v1  ;;  %v1123_v15 = vpack.c.bf16 %v181_v3, %v174_v2  ;;  %v195_v16 = vand.u32 4294901760, %v194_v4 }
  0x37   :  { %v208_v19 = vsub.f32 %v1557_v59, %v207_v5  ;;  %v1601_v20 = vsub.f32 %v1462_v22, %v96_v27  ;;  %v163_v21 = vand.u32 4294901760, %v162_v7  ;;  %v1223_v24 = vpack.c.bf16 %v193_v58, %v186_v54 }
  0x38   :  { %1106 = vmatpush3.bf16.msra.mxu1 %v1476_v25  ;;  %1202 = vmatpush3.bf16.msra.mxu0 %v1476_v25  ;;  %v228_v26 = vand.u32 4294901760, %v1588_v8  ;;  %v1607_v30 = vsub.f32 %v1480_v28, %v99_v31  ;;  %v215_v32 = vsub.f32 %v1573_v0, %v214_v12  ;;  %v222_v33 = vsub.f32 %v1578_v1, %v221_v14 }
  0x39   :  { %1108 = vmatprep.subr.bf16.mxu1 %v1494_v34  ;;  %1204 = vmatprep.subr.bf16.mxu0 %v1494_v34  ;;  %v1616_v22 = vsub.f32 %v1482_v29, %v102_v35  ;;  %v1127_v27 = vpack.c.bf16 %v195_v16, %v188_v9  ;;  %v202_v47 = vand.u32 4294901760, %v201_v11  ;;  %v209_v48 = vand.u32 4294901760, %v208_v19 }
  0x3a   :  { %v235_v28 = vand.u32 4294901760, %v1601_v20  ;;  %v1227_v31 = vpack.c.bf16 %v207_v5, %v200_v63  ;;  %v229_v54 = vsub.f32 %v1588_v8, %v228_v26  ;;  %v1623_v56 = vsub.f32 %v1497_v36, %v105_v41 }
  0x3b   :  { %v216_v29 = vand.u32 4294901760, %v215_v32  ;;  %v223_v35 = vand.u32 4294901760, %v222_v33  ;;  %v242_v57 = vand.u32 4294901760, %v1607_v30  ;;  %v249_v58 = vand.u32 4294901760, %v1616_v22 }
  0x3c   :  { %1110 = vmatpush3.bf16.msra.mxu1 %v1494_v34  ;;  %1206 = vmatpush3.bf16.msra.mxu0 %v1494_v34  ;;  %v1131_v62 = vpack.c.bf16 %v209_v48, %v202_v47  ;;  %v1631_v63 = vsub.f32 %v1499_v37, %v108_v42  ;;  %v1231_v36 = vpack.c.bf16 %v221_v14, %v214_v12  ;;  %v230_v41 = vand.u32 4294901760, %v229_v54 }
  0x3d   :  { %1112 = vmatprep.subr.bf16.mxu1 %v1523_v46  ;;  %1208 = vmatprep.subr.bf16.mxu0 %v1523_v46  ;;  %v1135_v2 = vpack.c.bf16 %v223_v35, %v216_v29  ;;  %v243_v3 = vsub.f32 %v1607_v30, %v242_v57  ;;  %v250_v4 = vsub.f32 %v1616_v22, %v249_v58  ;;  %v256_v5 = vand.u32 4294901760, %v1623_v56 }
  0x3e   :  { %v263_v37 = vand.u32 4294901760, %v1631_v63  ;;  %v1642_v42 = vsub.f32 %v1511_v43, %v111_v50  ;;  %v1647_v7 = vsub.f32 %v1513_v44, %v114_v51  ;;  %v1235_v9 = vpack.c.bf16 %v235_v28, %v228_v26 }
  0x3f   :  { %v244_v11 = vand.u32 4294901760, %v243_v3  ;;  %v251_v12 = vand.u32 4294901760, %v250_v4  ;;  %v257_v14 = vsub.f32 %v1623_v56, %v256_v5  ;;  %v1239_v51 = vpack.c.bf16 %v249_v58, %v242_v57 }
  0x40   :  { %1114 = vmatpush3.bf16.msra.mxu1 %v1523_v46  ;;  %1210 = vmatpush3.bf16.msra.mxu0 %v1523_v46  ;;  %v264_v16 = vsub.f32 %v1631_v63, %v263_v37  ;;  %v270_v43 = vand.u32 4294901760, %v1642_v42  ;;  %v277_v50 = vand.u32 4294901760, %v1647_v7  ;;  %v1243_v33 = vpack.c.bf16 %v263_v37, %v256_v5 }
  0x41   :  { %1116 = vmatprep.subr.bf16.mxu1 %v1541_v53  ;;  %1212 = vmatprep.subr.bf16.mxu0 %v1541_v53  ;;  %v1143_v44 = vpack.c.bf16 %v251_v12, %v244_v11  ;;  %v258_v19 = vand.u32 4294901760, %v257_v14  ;;  %v1159_v54 = vpack.c.bf16 %v1528_v49, %v1515_v45 }
  0x42   :  { %v278_v26 = vsub.f32 %v1647_v7, %v277_v50 }
  0x44   :  { %1118 = vmatpush3.bf16.msra.mxu1 %v1541_v53  ;;  %1214 = vmatpush3.bf16.msra.mxu0 %v1541_v53  ;;  %v279_v47 = vand.u32 4294901760, %v278_v26 }
  0x45   :  { %1120 = vmatprep.subr.bf16.mxu1 %v1563_v60  ;;  %1216 = vmatprep.subr.bf16.mxu0 %v1563_v60 }
  0x48   :  { %1122 = vmatpush3.bf16.msra.mxu1 %v1563_v60  ;;  %1218 = vmatpush3.bf16.msra.mxu0 %v1563_v60 }
  0x49   :  { %1124 = vmatprep.subr.bf16.mxu1 %v1123_v15  ;;  %1220 = vmatprep.subr.bf16.mxu0 %v1219_v6 }
  0x4b   :  { %914 = vmatmul.mubr.f32.vlgmr.msra.gmra.mrb[0].mxu1 %v163_v21  ;;  %1019 = vmatmul.mubr.f32.vlgmr.msra.gmra.mrb[0].mxu0 %v161_v61  ;;  %v236_v61 = vsub.f32 %v1601_v20, %v235_v28  ;;  %v265_v21 = vand.u32 4294901760, %v264_v16  ;;  %v1247_v28 = vpack.c.bf16 %v277_v50, %v270_v43 }
  0x4c   :  { %1126 = vmatpush3.bf16.msra.mxu1 %v1123_v15  ;;  %1222 = vmatpush3.bf16.msra.mxu0 %v1219_v6 }
  0x4d   :  { %1128 = vmatprep.subr.bf16.mxu1 %v1127_v27  ;;  %1224 = vmatprep.subr.bf16.mxu0 %v1223_v24  ;;  %v237_v6 = vand.u32 4294901760, %v236_v61  ;;  %v1147_v32 = vpack.c.bf16 %v265_v21, %v258_v19 }
  0x4e   :  { %948 = vmatprep.mubr.f32.mxu1 %v1448_v17  ;;  %1053 = vmatprep.mubr.f32.mxu0 %v1448_v17 }
  0x4f   :  { %v1139_v15 = vpack.c.bf16 %v237_v6, %v230_v41 }
  0x50   :  { %1130 = vmatpush3.bf16.msra.mxu1 %v1127_v27  ;;  %1226 = vmatpush3.bf16.msra.mxu0 %v1223_v24  ;;  %v271_v24 = vsub.f32 %v1642_v42, %v270_v43 }
  0x51   :  { %1132 = vmatprep.subr.bf16.mxu1 %v1131_v62  ;;  %1228 = vmatprep.subr.bf16.mxu0 %v1227_v31 }
  0x52   :  { %v272_v27 = vand.u32 4294901760, %v271_v24 }
  0x54   :  { %1134 = vmatpush3.bf16.msra.mxu1 %v1131_v62  ;;  %1230 = vmatpush3.bf16.msra.mxu0 %v1227_v31  ;;  %v1151_v48 = vpack.c.bf16 %v279_v47, %v272_v27  ;;  %v1155_v31 = vpack.c.bf16 %v1503_v39, %v1501_v38  ;;  %v1163_v38 = vpack.c.bf16 %v1557_v59, %v1547_v55 }
  0x55   :  { %1136 = vmatprep.subr.bf16.mxu1 %v1135_v2  ;;  %1232 = vmatprep.subr.bf16.mxu0 %v1231_v36  ;;  %v1167_v39 = vpack.c.bf16 %v1578_v1, %v1573_v0 }
  0x58   :  { %1138 = vmatpush3.bf16.msra.mxu1 %v1135_v2  ;;  %1234 = vmatpush3.bf16.msra.mxu0 %v1231_v36 }
  0x59   :  { %1140 = vmatprep.subr.bf16.mxu1 %v1139_v15  ;;  %1236 = vmatprep.subr.bf16.mxu0 %v1235_v9 }
  0x5c   :  { %1142 = vmatpush3.bf16.msra.mxu1 %v1139_v15  ;;  %1238 = vmatpush3.bf16.msra.mxu0 %v1235_v9 }
  0x5d   :  { %1144 = vmatprep.subr.bf16.mxu1 %v1143_v44  ;;  %1240 = vmatprep.subr.bf16.mxu0 %v1239_v51 }
  0x60   :  { %1146 = vmatpush3.bf16.msra.mxu1 %v1143_v44  ;;  %1242 = vmatpush3.bf16.msra.mxu0 %v1239_v51 }
  0x61   :  { %1148 = vmatprep.subr.bf16.mxu1 %v1147_v32  ;;  %1244 = vmatprep.subr.bf16.mxu0 %v1243_v33 }
  0x64   :  { %1150 = vmatpush3.bf16.msra.mxu1 %v1147_v32  ;;  %1246 = vmatpush3.bf16.msra.mxu0 %v1243_v33 }
  0x65   :  { %1152 = vmatprep.subr.bf16.mxu1 %v1151_v48  ;;  %1248 = vmatprep.subr.bf16.mxu0 %v1247_v28 }
  0x68   :  { %1154 = vmatpush3.bf16.msra.mxu1 %v1151_v48  ;;  %1250 = vmatpush3.bf16.msra.mxu0 %v1247_v28 }
  0x69   :  { %1156 = vmatprep.subr.bf16.mxu1 %v1155_v31  ;;  %1252 = vmatprep.subr.bf16.mxu0 %v1434_v10 }
  0x6b   :  { %949 = vmatmul.mubr.f32.vlgmr.msra.gmra.mrb[0].mxu1 %v1505_v40  ;;  %1054 = vmatmul.mubr.f32.vlgmr.msra.gmra.mrb[0].mxu0 %v1505_v40 }
  0x6c   :  { %1158 = vmatpush3.bf16.msra.mxu1 %v1155_v31  ;;  %1254 = vmatpush3.bf16.msra.mxu0 %v1434_v10  ;;  %v1171_v10 = vpack.c.bf16 %v1601_v20, %v1588_v8 }
  0x6d   :  { %1160 = vmatprep.subr.bf16.mxu1 %v1159_v54  ;;  %1256 = vmatprep.subr.bf16.mxu0 %v1438_v13 }
  0x6e   :  { %983 = vmatprep.mubr.f32.mxu1 %v1465_v23  ;;  %1088 = vmatprep.mubr.f32.mxu0 %v1448_v17  ;;  %v1179_v17 = vpack.c.bf16 %v1631_v63, %v1623_v56  ;;  %v772_v23 = vld [vmem:[%s1713_s2] ss:$0 sm:$0xff] }
  0x70   :  { %1162 = vmatpush3.bf16.msra.mxu1 %v1159_v54  ;;  %1258 = vmatpush3.bf16.msra.mxu0 %v1438_v13  ;;  %v1175_v13 = vpack.c.bf16 %v1616_v22, %v1607_v30 }
  0x71   :  { %1164 = vmatprep.subr.bf16.mxu1 %v1163_v38  ;;  %1260 = vmatprep.subr.bf16.mxu0 %v1456_v18 }
  0x74   :  { %1166 = vmatpush3.bf16.msra.mxu1 %v1163_v38  ;;  %1262 = vmatpush3.bf16.msra.mxu0 %v1456_v18  ;;  %v1183_v18 = vpack.c.bf16 %v1647_v7, %v1642_v42 }
  0x75   :  { %1168 = vmatprep.subr.bf16.mxu1 %v1167_v39  ;;  %1264 = vmatprep.subr.bf16.mxu0 %v1476_v25 }
  0x78   :  { %1170 = vmatpush3.bf16.msra.mxu1 %v1167_v39  ;;  %1266 = vmatpush3.bf16.msra.mxu0 %v1476_v25 }
  0x79   :  { %1172 = vmatprep.subr.bf16.mxu1 %v1171_v10  ;;  %1268 = vmatprep.subr.bf16.mxu0 %v1494_v34 }
  0x7c   :  { %1174 = vmatpush3.bf16.msra.mxu1 %v1171_v10  ;;  %1270 = vmatpush3.bf16.msra.mxu0 %v1494_v34 }
  0x7d   :  { %1176 = vmatprep.subr.bf16.mxu1 %v1175_v13  ;;  %1272 = vmatprep.subr.bf16.mxu0 %v1523_v46 }
  0x80   :  { %1178 = vmatpush3.bf16.msra.mxu1 %v1175_v13  ;;  %1274 = vmatpush3.bf16.msra.mxu0 %v1523_v46 }
  0x81   :  { %1180 = vmatprep.subr.bf16.mxu1 %v1179_v17  ;;  %1276 = vmatprep.subr.bf16.mxu0 %v1541_v53 }
  0x84   :  { %1182 = vmatpush3.bf16.msra.mxu1 %v1179_v17  ;;  %1278 = vmatpush3.bf16.msra.mxu0 %v1541_v53 }
  0x85   :  { %1184 = vmatprep.subr.bf16.mxu1 %v1183_v18  ;;  %1280 = vmatprep.subr.bf16.mxu0 %v1563_v60 }
  0x88   :  { %1186 = vmatpush3.bf16.msra.mxu1 %v1183_v18  ;;  %1282 = vmatpush3.bf16.msra.mxu0 %v1563_v60 }
  0x8b   :  { %984 = vmatmul.mubr.f32.vlgmr.msra.gmra.mrb[0].mxu1 %v1533_v52  ;;  %1089 = vmatmul.mubr.f32.vlgmr.msra.gmra.mrb[0].mxu0 %v1505_v40 }
 0x15e   :  { %v985_v25 = vpop.f32.mrb[0].mxu1  ;;  %v1090_v34 = vpop.f32.mrb[0].mxu0 }
 0x15f   :  { %v1283_v45 = vadd.f32 %v985_v25, %v772_v23  ;;  %v426_v46 = vpop.f32.mrb[1].mxu1  ;;  %v742_v49 = vpop.f32.mrb[1].mxu0 }
 0x160   :  { %v1285_v53 = vadd.f32 %v772_v23, %v426_v46 }
 0x161   :  { %v1284_v55 = vadd.f32 %v1283_v45, %v1090_v34 }
 0x162   :  { %v1286_v59 = vadd.f32 %v1285_v53, %v742_v49 }
 0x163   :  { %753 = vst [vmem:[#allocation7 + $0x8] sm:$0xff] %v1284_v55 }
 0x164   :  { %752 = vst [vmem:[#allocation7] sm:$0xff] %v1286_v59 }
 0x165   :  { %1355 = shalt.err (!%p1352_p6)
}
 0x166   :  { %s1356_s15 = scalar_lea.hbm %s1714_s3, 256 }
 0x167   :  { %p1357_p7 = scmp.ne.s32.totalorder %s1714_s3, %s1356_s15  ;;  %p1360_p8 = scmp.lt.u32.totalorder %s1356_s15, %s1714_s3 }
 0x169   :  { %p1362_p9 = pnand %p1360_p8, %p1357_p7 }
 0x16b   :  { %1365 = shalt.err (!%p1362_p9)
}
 0x16c   :  { %765 = dma.vmem_to_hbm [thread:$0]  %s760_s12, 256, %s1714_s3, [#allocation4], %s1373_s22, %s1373_s22, %s1374_s23  }
 0x16d   :  { %1370 = dma.done.wait [#allocation4], 256  }
 0x16e   :  { %1371 = vsyncadd [#allocation4], 4294967040 }
 0x16f   :  { %769 = vsyncpa [#allocation3], 1 }
 0x170   :  { %770 = vsyncpa [#allocation6], 1 }
 0x171   :  { %771 = vsyncpa [#allocation4], 1 }

</bundles_post_ra>
